<compile_context>
chip_gen: v5e
topology: v5e:2x2
jax: 0.10.0
libtpu: 0.0.40
codegen_flags: <defaults>
</compile_context>

<pallas_src>
import jax
import jax.numpy as jnp
from jax.experimental import pallas as pl
from jax.experimental.pallas import tpu as pltpu

_LANE = 128
_SUBLANE = 8


def _round_up(x, m):
    return ((x + m - 1) // m) * m


def _goal_onehot_kernel(idx_ref, table_ref, out_ref):
    # idx_ref:   (TN, 1)  int32   -- tile of flattened goal indices
    # table_ref: (G, E)   float32 -- full embedding table (VMEM-resident)
    # out_ref:   (TN, E)  float32 -- gathered embeddings for this tile
    idx = idx_ref[...]                                            # (TN, 1)
    tn = idx_ref.shape[0]
    g = table_ref.shape[0]
    goal_ids = jax.lax.broadcasted_iota(jnp.int32, (tn, g), 1)    # (TN, G)
    onehot = (idx == goal_ids).astype(table_ref.dtype)            # (TN, G)
    # HIGHEST precision: exact f32 row selection (default MXU precision would
    # truncate the f32 table to bf16 and miss the 1e-6 match vs jnp.take).
    out_ref[...] = jnp.dot(
        onehot,
        table_ref[...],
        preferred_element_type=jnp.float32,
        precision=jax.lax.Precision.HIGHEST,
    ).astype(out_ref.dtype)


def goal_encoder_forward(goal_encoding, embed_table, *, tile_n=2048):
    """Pallas equivalent of `self.embed(goal_encoding)`.

    goal_encoding: int array of arbitrary shape (values in [0, num_goals))
    embed_table:   (num_goals, embed_size) float32
    returns:       (*goal_encoding.shape, embed_size) float32
    """
    assert tile_n % _SUBLANE == 0, "tile_n must be a multiple of 8 sublanes"
    num_goals, embed_size = embed_table.shape
    orig_shape = goal_encoding.shape
    idx = goal_encoding.reshape(-1, 1).astype(jnp.int32)
    n = idx.shape[0]

    # ---- tile / grid selection -------------------------------------------
    # (8,128) rule: with >1 grid step the row-tile must be a multiple of 8;
    # with a single step the block may equal the full (ragged) extent.
    small_cutoff = min(tile_n, 1024)
    if n <= small_cutoff:
        # Trivial work: one grid step, block == full array (always legal).
        tile = n
    elif n <= tile_n:
        # Medium: force >= 2 grid steps so ("parallel",) can use both of
        # v7x's TensorCores instead of idling one behind a single huge tile.
        tile = _SUBLANE * pl.cdiv(pl.cdiv(n, 2), _SUBLANE)
    else:
        # Large-N steady state: big tiles amortize per-step overhead.
        tile = tile_n
    grid = (pl.cdiv(n, tile),)

    # ---- VMEM budget (v5e: 16 MiB default scoped; v6e/v7x: 32 MiB;
    #                   v7x physical ceiling: 64 MiB) ------------------------
    # The (tile,1) index block lane-pads to (tile,128) in VMEM, so it costs as
    # much as an output tile of width 128 -- include it when sizing tile_n.
    idx_tile_bytes = tile * _LANE * 4
    out_tile_bytes = tile * _round_up(embed_size, _LANE) * 4
    table_bytes = _round_up(num_goals, _SUBLANE) * _round_up(embed_size, _LANE) * 4
    vmem_needed = 2 * (idx_tile_bytes + out_tile_bytes + table_bytes)  # dbl-buffered

    compiler_kwargs = dict(dimension_semantics=("parallel",))
    if vmem_needed > 16 * 1024 * 1024:
        # Only raise the scoped limit when the default would be exceeded; cap
        # below v7x's 64 MiB physical VMEM.
        compiler_kwargs["vmem_limit_bytes"] = min(
            2 * vmem_needed, 60 * 1024 * 1024
        )

    cost = pl.CostEstimate(
        flops=2 * n * num_goals * embed_size,           # actual MXU flops
        transcendentals=0,
        bytes_accessed=(
            n * embed_size * 4                          # output store (dominant)
            + n * 4                                     # index read
            + num_goals * embed_size * 4                # table read (once)
        ),
    )

    out = pl.pallas_call(
        _goal_onehot_kernel,
        out_shape=jax.ShapeDtypeStruct((n, embed_size), embed_table.dtype),
        grid_spec=pltpu.PrefetchScalarGridSpec(
            num_scalar_prefetch=0,
            grid=grid,
            in_specs=[
                # indices tile (one index per sublane row; lane-padded in VMEM)
                pl.BlockSpec((tile, 1), lambda i: (i, 0)),
                # full embedding table, constant index_map -> resident across
                # steps (16x128 f32 = 8 KiB here).
                pl.BlockSpec((num_goals, embed_size), lambda i: (0, 0)),
            ],
            out_specs=pl.BlockSpec((tile, embed_size), lambda i: (i, 0)),
        ),
        compiler_params=pltpu.CompilerParams(**compiler_kwargs),
        cost_estimate=cost,
    )(idx, embed_table)

    return out.reshape(*orig_shape, embed_size)


def reference_forward(goal_encoding, embed_table):
    # Pure-JAX reference: exactly nn.Embedding's gather semantics.
    return jnp.take(embed_table, goal_encoding.astype(jnp.int32), axis=0)


if __name__ == "__main__":
    num_goals = 16
    embed_size = 128
    batch, seq = 2, 8

    key = jax.random.PRNGKey(0)
    k_table, k_idx, k_idx2, k_idx3 = jax.random.split(key, 4)

    # nn.Embedding default init: weight ~ N(0, 1)
    embed_table = jax.random.normal(
        k_table, (num_goals, embed_size), dtype=jnp.float32
    )

    # 1) Small case (n=16): single grid step, block == full array.
    goal_encoding = jax.random.randint(
        k_idx, (batch, seq), 0, num_goals, dtype=jnp.int32
    )
    out = jax.block_until_ready(goal_encoder_forward(goal_encoding, embed_table))
    ref = reference_forward(goal_encoding, embed_table)
    assert out.shape == (batch, seq, embed_size), out.shape
    assert jnp.allclose(out, ref, atol=1e-6, rtol=0.0), "mismatch vs reference"

    # 2) Multi-step case with a ragged, masked last block (n=350, tile_n=128 -> 3 steps).
    goal_encoding2 = jax.random.randint(
        k_idx2, (5, 70), 0, num_goals, dtype=jnp.int32
    )
    out2 = jax.block_until_ready(
        goal_encoder_forward(goal_encoding2, embed_table, tile_n=128)
    )
    ref2 = reference_forward(goal_encoding2, embed_table)
    assert out2.shape == (5, 70, embed_size), out2.shape
    assert jnp.allclose(out2, ref2, atol=1e-6, rtol=0.0), "mismatch (ragged)"

    # 3) Medium case (n=1500 at default tile_n): tile is split so the grid has
    #    >= 2 parallel steps (two-TensorCore path on v7x), ragged last block.
    goal_encoding3 = jax.random.randint(
        k_idx3, (30, 50), 0, num_goals, dtype=jnp.int32
    )
    out3 = jax.block_until_ready(goal_encoder_forward(goal_encoding3, embed_table))
    ref3 = reference_forward(goal_encoding3, embed_table)
    assert out3.shape == (30, 50, embed_size), out3.shape
    assert jnp.allclose(out3, ref3, atol=1e-6, rtol=0.0), "mismatch (2-step)"

    print("KERNEL_OK")
</pallas_src>

<mosaic_0001>
module attributes {stable_mosaic.version = 11 : i64} {
  func.func @_goal_onehot_kernel(%arg0: i32, %arg1: memref<16x1xi32, #tpu.memory_space<vmem>>, %arg2: memref<16x128xf32, #tpu.memory_space<vmem>>, %arg3: memref<16x128xf32, #tpu.memory_space<vmem>>) attributes {dimension_semantics = [#tpu.dimension_semantics<parallel>], iteration_bounds = array<i64: 1>, scalar_prefetch = 0 : i64, scratch_operands = 0 : i64, tpu.core_type = #tpu.core_type<tc>, window_params = [{transform_indices = @transform_0, window_bounds = array<i64: 16, 1>}, {pipeline_mode = #tpu.pipeline_mode<synchronous>, transform_indices = @transform_1, window_bounds = array<i64: 16, 128>}, {transform_indices = @transform_2, window_bounds = array<i64: 16, 128>}]} {
    %c0 = arith.constant 0 : index
    %c0_0 = arith.constant 0 : index
    %0 = vector.load %arg1[%c0, %c0_0] : memref<16x1xi32, #tpu.memory_space<vmem>>, vector<16x1xi32>
    %1 = tpu.iota {dimensions = array<i32: 1>} : vector<16x16xi32>
    %2 = vector.broadcast %0 : vector<16x1xi32> to vector<16x16xi32>
    %3 = arith.cmpi eq, %2, %1 : vector<16x16xi32>
    %4 = arith.extui %3 : vector<16x16xi1> to vector<16x16xi32>
    %5 = arith.sitofp %4 : vector<16x16xi32> to vector<16x16xf32>
    %c0_1 = arith.constant 0 : index
    %c0_2 = arith.constant 0 : index
    %6 = vector.load %arg2[%c0_1, %c0_2] : memref<16x128xf32, #tpu.memory_space<vmem>>, vector<16x128xf32>
    %cst = arith.constant dense<0.000000e+00> : vector<16x128xf32>
    %7 = tpu.matmul %5, %6, %cst {dimension_numbers = #tpu.dot_dimension_numbers<[1], [0], [0], [1], [0, 0, 1, 1], [], []>, precision = #tpu.contract_precision<fp32>} : vector<16x16xf32>, vector<16x128xf32>, vector<16x128xf32> -> vector<16x128xf32>
    %c0_3 = arith.constant 0 : index
    %c0_4 = arith.constant 0 : index
    %8 = vector.load %arg3[%c0_3, %c0_4] : memref<16x128xf32, #tpu.memory_space<vmem>>, vector<16x128xf32>
    tpu.vector_store %arg3[%c0_3, %c0_4], %7 {strides = array<i32>} : memref<16x128xf32, #tpu.memory_space<vmem>>, vector<16x128xf32>,
    return
  }
  func.func @transform_0(%arg0: i32) -> (i32, i32) {
    %c0_i32 = arith.constant 0 : i32
    %c0_i32_0 = arith.constant 0 : i32
    return %arg0, %c0_i32 : i32, i32
  }
  func.func @transform_1(%arg0: i32) -> (i32, i32) {
    %c0_i32 = arith.constant 0 : i32
    %c0_i32_0 = arith.constant 0 : i32
    %c0_i32_1 = arith.constant 0 : i32
    return %c0_i32, %c0_i32_0 : i32, i32
  }
  func.func @transform_2(%arg0: i32) -> (i32, i32) {
    %c0_i32 = arith.constant 0 : i32
    %c0_i32_0 = arith.constant 0 : i32
    return %arg0, %c0_i32 : i32, i32
  }
}

</mosaic_0001>

<bundles_post_ra>
// kernel: tpu_custom_call.1
= control target key start
LH: loop header
LB: loop body
LE: loop exit
PB: predicated region body
PF: predicated region fallthrough
CT: control target
= control target key end

     0   :  { %v291_v2 = vmov 0   ;;  %s334_s0 = inlined_call_operand.vmem [shape: s32[16,1], index: 0, kind: input, shape index: {}]   ;;  %s335_s1 = inlined_call_operand.vmem [shape: f32[16,128], index: 1, kind: input, shape index: {}]   ;;  %s336_s2 = inlined_call_operand.hbm [shape: f32[16,128], index: 2, kind: output, shape index: {}]  }
   0x1   :  { %v13_v0 = vld [vmem:[%s334_s0 + $0x8] sm:$0xff]  ;;  %264 = vset.pattern.permute.xlu0 %v291_v2 }
   0x2   :  { %v29_v1 = vld [vmem:[%s335_s1 + $0x8] sm:$0xff] }
   0x3   :  { %v51_v3 = vand.u32 4294901760, %v29_v1 }
   0x4   :  { %7 = vsyncpa [#allocation3], 0  ;;  %20 = vperm.xlu0 %264, %v13_v0   ;;  %v12_v6 = vld [vmem:[%s334_s0] sm:$0xff]  ;;  %v14_v15 = vlaneseq  ;;  %vm30_vm0 = vcmask 130048   ;;  %v292_v18 = vmov 0.0   ;;  %s293_s0 = smov [#allocation2]  }
   0x5   :  { %v87_v4 = vsub.f32 %v29_v1, %v51_v3  ;;  %255 = vmatpush.msra.mxu2 %v51_v3  ;;  %52 = vmatpush.msra.mxu0 %v51_v3  ;;  %v28_v9 = vld [vmem:[%s335_s1] sm:$0xff]  ;;  %s233_s1 = sshll.u32 %s293_s0, 4  ;;  %s235_s19 = sshll.u32 %s336_s2, 4  ;;  %s234_s1 = int_to_ptr.vmem [resolvable:$true] %s233_s1  ;;  %s236_s19 = int_to_ptr.hbm [resolvable:$true] %s235_s19 }
   0x6   :  { %v53_v10 = vand.u32 4294901760, %v28_v9  ;;  %v15_v16 = vand.u32 127, %v14_v15  ;;  %s294_s20 = smov 128   ;;  %s295_s21 = smov 8  }
   0x7   :  { %v88_v5 = vand.u32 4294901760, %v87_v4 }
   0x8   :  { %v93_v11 = vsub.f32 %v28_v9, %v53_v10  ;;  %256 = vmatpush.msra.mxu2 %v53_v10  ;;  %54 = vmatpush.msra.mxu0 %v53_v10 }
   0x9   :  { %v89_v7 = vsub.f32 %v87_v4, %v88_v5 }
   0xa   :  { %123 = vmatpush.msrb.mxu2 %v87_v4  ;;  %186 = vmatpush.msrb.mxu0 %v88_v5  ;;  %v94_v12 = vand.u32 4294901760, %v93_v11 }
   0xb   :  { %v90_v8 = vand.u32 4294901760, %v89_v7 }
   0xc   :  { %17 = vperm.xlu0 %264, %v12_v6   ;;  %126 = vmatpush.msrb.mxu2 %v93_v11  ;;  %v95_v13 = vsub.f32 %v93_v11, %v94_v12 }
   0xd   :  { %257 = vmatpush.msra.mxu3 %v90_v8  ;;  %91 = vmatpush.msra.mxu1 %v90_v8 }
   0xe   :  { %190 = vmatpush.msrb.mxu0 %v94_v12  ;;  %v96_v14 = vand.u32 4294901760, %v95_v13 }
  0x10   :  { %258 = vmatpush.msra.mxu3 %v96_v14  ;;  %97 = vmatpush.msra.mxu1 %v96_v14 }
  0x12   :  { %153 = vmatpush.msrb.mxu3 %v51_v3  ;;  %215 = vmatpush.msrb.mxu1 %v51_v3 }
  0x14   :  { %155 = vmatpush.msrb.mxu3 %v53_v10  ;;  %217 = vmatpush.msrb.mxu1 %v53_v10 }
  0x76   :  { %v21_v17 = vpop.permute.xlu0 %20 }
  0x77   :  { %vm23_vm1 = vcmp.eq.s32.totalorder %v21_v17, %v15_v16 }
  0x78   :  { %v248_v19 = vsel %vm23_vm1, 1.0, %v292_v18 }
  0x79   :  { %v35_v20 = vsel %vm30_vm0, %v248_v19, 0  ;;  %250 = vmatmul.msk.f32.vlgmr.msra.gmra.mxu3 %vm30_vm0, %v248_v19 }
  0x7a   :  { %v64_v21 = vsub.f32 %v35_v20, %v35_v20 }
  0x7c   :  { %v65_v22 = vand.u32 4294901760, %v64_v21 }
  0x7e   :  { %v18_v23 = vpop.permute.xlu0 %17  ;;  %v66_v24 = vsub.f32 %v64_v21, %v65_v22 }
  0x7f   :  { %vm22_vm2 = vcmp.eq.s32.totalorder %v18_v23, %v15_v16 }
  0x80   :  { %v247_v25 = vsel %vm22_vm2, 1.0, %v292_v18  ;;  %v67_v26 = vand.u32 4294901760, %v66_v24 }
  0x81   :  { %v32_v27 = vsel %vm30_vm0, %v247_v25, 0  ;;  %249 = vmatmul.msk.f32.vlgmr.msra.gmra.mxu1 %vm30_vm0, %v247_v25 }
  0x82   :  { %v56_v28 = vsub.f32 %v32_v27, %v32_v27  ;;  %68 = vmatmul.f32.vlgmr.msra.gmra.mxu2 %v67_v26 }
  0x84   :  { %v57_v29 = vand.u32 4294901760, %v56_v28 }
  0x86   :  { %159 = vmatmul.f32.vlgmr.msrb.gmra.mxu3 %v57_v29  ;;  %v58_v30 = vsub.f32 %v56_v28, %v57_v29 }
  0x88   :  { %v59_v31 = vand.u32 4294901760, %v58_v30 }
  0x89   :  { %253 = vmatmul.msk.f32.vlgmr.msrb.gmra.mxu1 %vm30_vm0, %v247_v25 }
  0x8a   :  { %60 = vmatmul.f32.vlgmr.msra.gmra.mxu0 %v59_v31  ;;  %129 = vmatmul.f32.vlgmr.msrb.gmra.mxu2 %v56_v28 }
  0x8e   :  { %165 = vmatmul.f32.gmra.mxu3 %v65_v22 }
  0x91   :  { %254 = vmatmul.msk.f32.gmra.mxu1 %vm30_vm0, %v248_v19 }
  0x92   :  { %134 = vmatmul.f32.gmra.mxu2 %v64_v21  ;;  %251 = vmatmul.msk.f32.vlgmr.msrb.gmra.mxu0 %vm30_vm0, %v247_v25 }
  0x9a   :  { %252 = vmatmul.msk.f32.gmra.mxu0 %vm30_vm0, %v248_v19 }
  0xfc   :  { %v104_v32 = vpop.f32.mrf.mxu3 }
  0xfe   :  { %v100_v34 = vpop.f32.mrf.mxu1 }
 0x105   :  { %v69_v33 = vpop.f32.mrf.mxu2 }
 0x106   :  { %v220_v42 = vpop.f32.mrf.mxu1  ;;  %v105_v44 = vadd.f32 %v104_v32, %v69_v33 }
 0x107   :  { %v61_v35 = vpop.f32.mrf.mxu0 }
 0x108   :  { %v101_v36 = vadd.f32 %v100_v34, %v61_v35 }
 0x109   :  { %v160_v37 = vpop.f32.mrf.mxu3 }
 0x10d   :  { %v130_v38 = vpop.f32.mrf.mxu2 }
 0x10e   :  { %v131_v39 = vadd.f32 %v130_v38, %v101_v36  ;;  %v224_v52 = vpop.f32.mrf.mxu1 }
 0x10f   :  { %v193_v40 = vpop.f32.mrf.mxu0 }
 0x110   :  { %v161_v41 = vadd.f32 %v160_v37, %v131_v39 }
 0x111   :  { %v166_v48 = vpop.f32.mrf.mxu3 }
 0x112   :  { %v194_v43 = vadd.f32 %v193_v40, %v161_v41 }
 0x114   :  { %v221_v45 = vadd.f32 %v220_v42, %v194_v43 }
 0x115   :  { %v135_v46 = vpop.f32.mrf.mxu2 }
 0x116   :  { %227 = vst [vmem:[#allocation2] sm:$0xff] %v221_v45  ;;  %v136_v47 = vadd.f32 %v135_v46, %v105_v44 }
 0x117   :  { %v197_v50 = vpop.f32.mrf.mxu0 }
 0x118   :  { %v167_v49 = vadd.f32 %v166_v48, %v136_v47 }
 0x11a   :  { %v198_v51 = vadd.f32 %v197_v50, %v167_v49 }
 0x11c   :  { %v225_v53 = vadd.f32 %v224_v52, %v198_v51 }
 0x11e   :  { %228 = vst [vmem:[#allocation2 + $0x8] sm:$0xff] %v225_v53 }
 0x11f   :  { %241 = dma.vmem_to_hbm [thread:$0]  %s234_s1, 256, %s236_s19, [#allocation3], %s294_s20, %s294_s20, %s295_s21  }
 0x120   :  { %289 = dma.done.wait [#allocation3], 256  }
 0x121   :  { %290 = vsyncadd [#allocation3], 4294967040 }
 0x122   :  { %246 = vsyncpa [#allocation3], 1 }

</bundles_post_ra>
